<compile_context>
chip_gen: v7x
topology: tpu7x:2x2x1
jax: 0.10.0
libtpu: 0.0.40
codegen_flags: <defaults>
</compile_context>

<pallas_src>
import functools

import jax
import jax.numpy as jnp
from jax.experimental import pallas as pl
from jax.experimental.pallas import tpu as pltpu


def _round_up(x, m):
    return ((x + m - 1) // m) * m


def _cdiv(a, b):
    return -(-a // b)


# ---------------------------------------------------------------------------
# Kernel A: small batch — batch on sublanes, sequence on lanes.
# ---------------------------------------------------------------------------
def _sum_sublanes_kernel(scores_ref, out_ref, acc_ref):
    """Sum pre-masked per-token scores over the sequence (lane) axis.

    scores_ref: [B_pad, TS] bf16   pre-masked scores (seq on lanes)
    out_ref:    [1, B_pad, 1] f32  partial sum for this S-split (v7x core split)
    acc_ref:    [B_pad, 1] f32     VMEM accumulator
    """
    s_idx = pl.program_id(1)

    @pl.when(s_idx == 0)
    def _():
        acc_ref[...] = jnp.zeros(acc_ref.shape, acc_ref.dtype)

    # Lane (XLU) reduction; f32 accumulation. XLU is otherwise idle here.
    acc_ref[...] += jnp.sum(scores_ref[...].astype(jnp.float32),
                            axis=-1, keepdims=True)

    @pl.when(s_idx == pl.num_programs(1) - 1)
    def _():
        out_ref[0] = acc_ref[...]


def _masked_seq_sum_sublanes(token_ids, mask_f32, score_table, *, seq_tile):
    """Returns sum_s mask[b,s] * score_table[tok[b,s]]  (shape [B], f32)."""
    B, S = token_ids.shape

    # Gather directly into the kernel layout, pre-mask, stream as bf16.
    scores = (jnp.take(score_table, token_ids, axis=0) * mask_f32)      # [B, S] f32
    scores = scores.astype(jnp.bfloat16)

    TS = min(_round_up(seq_tile, 128), _round_up(S, 128))   # lanes per tile
    n_s_tiles = _cdiv(S, TS)
    n_split = 2 if n_s_tiles >= 2 else 1                    # v7x dual-TC split
    S_pad = _round_up(S, n_split * TS)
    B_pad = _round_up(B, 16)                                 # bf16 sublane packing
    ns_per_split = (S_pad // TS) // n_split

    scores_bs = jnp.pad(scores, ((0, B_pad - B), (0, S_pad - S)))

    out = pl.pallas_call(
        _sum_sublanes_kernel,
        out_shape=jax.ShapeDtypeStruct((n_split, B_pad, 1), jnp.float32),
        grid_spec=pltpu.PrefetchScalarGridSpec(
            num_scalar_prefetch=0,
            grid=(n_split, ns_per_split),                    # (parallel, reduction)
            in_specs=[pl.BlockSpec((B_pad, TS),
                                   lambda c, s: (0, c * ns_per_split + s))],
            out_specs=pl.BlockSpec((1, B_pad, 1), lambda c, s: (c, 0, 0)),
            scratch_shapes=[pltpu.VMEM((B_pad, 1), jnp.float32)],
        ),
        compiler_params=pltpu.CompilerParams(
            dimension_semantics=("parallel", "arbitrary")),
    )(scores_bs)

    # Combine the per-split partial sums (tiny op) and drop batch padding.
    return jnp.sum(out[:, :B, 0], axis=0)                    # [B]


# ---------------------------------------------------------------------------
# Kernel B: large batch — sequence on sublanes, batch lane-dense (128 lanes).
# ---------------------------------------------------------------------------
def _sum_lanes_kernel(scores_ref, out_ref, acc_ref, ones_ref):
    """Sum pre-masked per-token scores over the sequence (sublane) axis via MXU.

    scores_ref: [TS, TB] bf16  pre-masked scores (batch on lanes)
    out_ref:    [1, TB]  f32   per-batch sums (lane-dense stores)
    acc_ref:    [1, TB]  f32   VMEM accumulator
    ones_ref:   [1, TS]  bf16  ones LHS, built once (no per-step broadcast)
    """
    s_idx = pl.program_id(1)

    @pl.when(s_idx == 0)
    def _():
        acc_ref[...] = jnp.zeros(acc_ref.shape, acc_ref.dtype)
        ones_ref[...] = jnp.ones(ones_ref.shape, ones_ref.dtype)

    # MXU reduction over S: [1,TS] @ [TS,TB] -> lane-dense [1,TB] f32 result.
    acc_ref[...] += jnp.dot(ones_ref[...], scores_ref[...],
                            preferred_element_type=jnp.float32)

    @pl.when(s_idx == pl.num_programs(1) - 1)
    def _():
        out_ref[...] = acc_ref[...]


def _masked_seq_sum_lanes(token_ids, mask_f32, score_table, *, seq_tile, batch_tile):
    """Returns sum_s mask[b,s] * score_table[tok[b,s]]  (shape [B], f32)."""
    B, S = token_ids.shape

    # Gather directly into the [S, B] layout, pre-mask, stream as bf16.
    scores = (jnp.take(score_table, token_ids.T, axis=0) * mask_f32.T)   # [S, B] f32
    scores = scores.astype(jnp.bfloat16)

    TB = batch_tile
    B_pad = _round_up(B, TB)
    TS = min(_round_up(seq_tile, 16), _round_up(S, 16))      # bf16 sublane packing
    S_pad = _round_up(S, TS)

    scores_sb = jnp.pad(scores, ((0, S_pad - S), (0, B_pad - B)))

    out = pl.pallas_call(
        _sum_lanes_kernel,
        out_shape=jax.ShapeDtypeStruct((1, B_pad), jnp.float32),
        grid_spec=pltpu.PrefetchScalarGridSpec(
            num_scalar_prefetch=0,
            grid=(B_pad // TB, S_pad // TS),                 # (parallel, reduction)
            in_specs=[pl.BlockSpec((TS, TB), lambda b, s: (s, b))],
            out_specs=pl.BlockSpec((1, TB), lambda b, s: (0, b)),
            scratch_shapes=[pltpu.VMEM((1, TB), jnp.float32),
                            pltpu.VMEM((1, TS), jnp.bfloat16)],
        ),
        compiler_params=pltpu.CompilerParams(
            dimension_semantics=("parallel", "arbitrary")),
    )(scores_sb)

    return out[0, :B]                                         # [B]


# ---------------------------------------------------------------------------
# Wrapper reproducing RM.forward semantics (post-tokenization).
# ---------------------------------------------------------------------------
def rm_forward(token_ids, attn_mask, emb_table, w_cls, b_cls, *,
               seq_tile=2048, batch_tile=128, small_batch_threshold=64):
    B, S = token_ids.shape

    # Exact collapse of "mean over classifier outputs" (once, plain JAX).
    w_mean = jnp.mean(w_cls.astype(jnp.float32), axis=1)               # [H]
    b_mean = jnp.mean(b_cls.astype(jnp.float32))                       # scalar
    score_table = emb_table.astype(jnp.float32) @ w_mean               # [V]

    mask_f32 = attn_mask.astype(jnp.float32)                           # [B, S]
    denom = jnp.maximum(jnp.sum(mask_f32, axis=1), 1.0)                # [B]

    if B >= small_batch_threshold:
        num = _masked_seq_sum_lanes(token_ids, mask_f32, score_table,
                                    seq_tile=seq_tile, batch_tile=batch_tile)
    else:
        num = _masked_seq_sum_sublanes(token_ids, mask_f32, score_table,
                                       seq_tile=seq_tile)

    return num / denom + b_mean                                        # [B]


if __name__ == "__main__":
    key = jax.random.PRNGKey(0)

    def make_case(k, B, S, H, C, V, min_len):
        k_ids, k_len, k_emb, k_w, k_b = jax.random.split(k, 5)
        token_ids = jax.random.randint(k_ids, (B, S), 0, V, dtype=jnp.int32)
        seq_lens = jax.random.randint(k_len, (B,), min_len, S + 1, dtype=jnp.int32)
        attn_mask = (jnp.arange(S)[None, :] < seq_lens[:, None]).astype(jnp.float32)
        emb_table = jax.random.normal(k_emb, (V, H), dtype=jnp.float32) * 0.1
        w_cls = jax.random.normal(k_w, (H, C), dtype=jnp.float32) * 0.1
        b_cls = jax.random.normal(k_b, (1, C), dtype=jnp.float32) * 0.1
        return token_ids, attn_mask, emb_table, w_cls, b_cls

    def reference(token_ids, attn_mask, emb_table, w_cls, b_cls):
        # Un-collapsed math: embed -> masked mean pool -> linear head -> class mean.
        x = jnp.take(emb_table, token_ids, axis=0)                     # [B, S, H]
        pooled = jnp.sum(x * attn_mask[:, :, None], axis=1) / \
            jnp.maximum(jnp.sum(attn_mask, axis=1, keepdims=True), 1.0)
        return (pooled @ w_cls + b_cls).mean(axis=-1)

    # (B, S, H, C, V, min_len, kwargs) — exercises every kernel path.
    cases = [
        (2,   8,  32, 4, 64, 3, {}),                     # small-batch, single S tile
        (4, 300,  32, 4, 64, 0, dict(seq_tile=128)),     # small-batch, multi-tile + S split
        (160, 80, 32, 4, 64, 1, dict(seq_tile=32)),      # lane-dense batch, multi-tile
    ]

    keys = jax.random.split(key, len(cases))
    out_main = None
    for k, (B, S, H, C, V, min_len, kw) in zip(keys, cases):
        args = make_case(k, B, S, H, C, V, min_len)
        fwd = jax.jit(functools.partial(rm_forward, **kw))
        out = fwd(*args)
        jax.block_until_ready(out)
        ref = reference(*args)
        assert out.shape == (B,)
        # bf16 score stream -> slightly looser tolerance than pure-f32.
        assert jnp.allclose(out, ref, atol=1e-2, rtol=1e-2), (B, S, out, ref)
        if out_main is None:
            out_main = out

    print("KERNEL_OK")
</pallas_src>

<mosaic_0001>
module attributes {stable_mosaic.version = 11 : i64} {
  func.func @_sum_sublanes_kernel(%arg0: i32, %arg1: i32, %arg2: memref<16x128xbf16, #tpu.memory_space<vmem>>, %arg3: memref<1x16x1xf32, #tpu.memory_space<vmem>>, %arg4: memref<16x1xf32, #tpu.memory_space<vmem>>) attributes {dimension_semantics = [#tpu.dimension_semantics<parallel>, #tpu.dimension_semantics<arbitrary>], iteration_bounds = array<i64: 1, 1>, scalar_prefetch = 0 : i64, scratch_operands = 1 : i64, tpu.core_type = #tpu.core_type<tc>, window_params = [{transform_indices = @transform_0, window_bounds = array<i64: 16, 128>}, {transform_indices = @transform_1, window_bounds = array<i64: 1, 16, 1>}]} {
    %c0_i32 = arith.constant 0 : i32
    %0 = arith.cmpi eq, %arg1, %c0_i32 : i32
    %1 = arith.extui %0 : i1 to i32
    %c0_i32_0 = arith.constant 0 : i32
    %2 = arith.cmpi ne, %1, %c0_i32_0 : i32
    scf.if %2 {
      %cst_8 = arith.constant 0.000000e+00 : f32
      %13 = vector.broadcast %cst_8 : f32 to vector<16x1xf32>
      %c0_9 = arith.constant 0 : index
      %c0_10 = arith.constant 0 : index
      %14 = vector.load %arg4[%c0_9, %c0_10] : memref<16x1xf32, #tpu.memory_space<vmem>>, vector<16x1xf32>
      tpu.vector_store %arg4[%c0_9, %c0_10], %13 {strides = array<i32>} : memref<16x1xf32, #tpu.memory_space<vmem>>, vector<16x1xf32>,
    } else {
    }
    %c0 = arith.constant 0 : index
    %c0_1 = arith.constant 0 : index
    %3 = vector.load %arg4[%c0, %c0_1] : memref<16x1xf32, #tpu.memory_space<vmem>>, vector<16x1xf32>
    %c0_2 = arith.constant 0 : index
    %c0_3 = arith.constant 0 : index
    %4 = vector.load %arg2[%c0_2, %c0_3] : memref<16x128xbf16, #tpu.memory_space<vmem>>, vector<16x128xbf16>
    %5 = arith.extf %4 : vector<16x128xbf16> to vector<16x128xf32>
    %cst = arith.constant dense<0.000000e+00> : vector<16xf32>
    %6 = vector.multi_reduction <add>, %5, %cst [1] : vector<16x128xf32> to vector<16xf32>
    %7 = vector.shape_cast %6 : vector<16xf32> to vector<16x1xf32>
    %8 = arith.addf %3, %7 : vector<16x1xf32>
    %c0_4 = arith.constant 0 : index
    %c0_5 = arith.constant 0 : index
    %9 = vector.load %arg4[%c0_4, %c0_5] : memref<16x1xf32, #tpu.memory_space<vmem>>, vector<16x1xf32>
    tpu.vector_store %arg4[%c0_4, %c0_5], %8 {strides = array<i32>} : memref<16x1xf32, #tpu.memory_space<vmem>>, vector<16x1xf32>,
    %c0_i32_6 = arith.constant 0 : i32
    %10 = arith.cmpi eq, %arg1, %c0_i32_6 : i32
    %11 = arith.extui %10 : i1 to i32
    %c0_i32_7 = arith.constant 0 : i32
    %12 = arith.cmpi ne, %11, %c0_i32_7 : i32
    scf.if %12 {
      %c0_8 = arith.constant 0 : index
      %c0_9 = arith.constant 0 : index
      %13 = vector.load %arg4[%c0_8, %c0_9] : memref<16x1xf32, #tpu.memory_space<vmem>>, vector<16x1xf32>
      %c0_10 = arith.constant 0 : index
      %c0_11 = arith.constant 0 : index
      %c0_12 = arith.constant 0 : index
      %14 = vector.load %arg3[%c0_10, %c0_11, %c0_12] : memref<1x16x1xf32, #tpu.memory_space<vmem>>, vector<1x16x1xf32>
      %15 = vector.shape_cast %14 : vector<1x16x1xf32> to vector<16x1xf32>
      %16 = vector.shape_cast %13 : vector<16x1xf32> to vector<1x16x1xf32>
      tpu.vector_store %arg3[%c0_10, %c0_11, %c0_12], %16 {strides = array<i32>} : memref<1x16x1xf32, #tpu.memory_space<vmem>>, vector<1x16x1xf32>,
    } else {
    }
    return
  }
  func.func @transform_0(%arg0: i32, %arg1: i32) -> (i32, i32) {
    %c1_i32 = arith.constant 1 : i32
    %0 = arith.muli %arg0, %c1_i32 : i32
    %1 = arith.addi %0, %arg1 : i32
    %c0_i32 = arith.constant 0 : i32
    %c0_i32_0 = arith.constant 0 : i32
    return %c0_i32, %1 : i32, i32
  }
  func.func @transform_1(%arg0: i32, %arg1: i32) -> (i32, i32, i32) {
    %c0_i32 = arith.constant 0 : i32
    %c0_i32_0 = arith.constant 0 : i32
    %c0_i32_1 = arith.constant 0 : i32
    return %arg0, %c0_i32, %c0_i32_0 : i32, i32, i32
  }
}

</mosaic_0001>

<bundles_post_ra>
// kernel: rm_forward.1
= control target key start
LH: loop header
LB: loop body
LE: loop exit
PB: predicated region body
PF: predicated region fallthrough
CT: control target
= control target key end

     0   :  { %vm29_vm0 = vcmask 7168   ;;  %v69_v1 = vmov 0.0   ;;  %s95_s0 = inlined_call_operand.vmem [shape: bf16[16,128], index: 0, kind: input, shape index: {}]   ;;  %s96_s1 = inlined_call_operand.vmem [shape: f32[1,16,1], index: 1, kind: output, shape index: {}]  }
   0x1   :  { %v65_v0 = vld [vmem:[%s95_s0] sm:$0xff]   ;;  %30 = vst.msk [vmem:[#allocation2] sm:$0xff] %vm29_vm0, %v69_v1  ;;  %31 = vst.msk [vmem:[#allocation2 + $0x8] sm:$0xff] %vm29_vm0, %v69_v1 }
   0x2   :  { %v66_v2 = vunpack.c.l.bf16 %v65_v0  ;;  %v67_v3 = vunpack.c.h.bf16 %v65_v0 }
   0x4   :  { %38 = vadd.xlane.f32.xlu0 %v66_v2 }
   0x8   :  { %40 = vadd.xlane.f32.xlu0 %v67_v3  ;;  %v32_v4 = vld [vmem:[#allocation2] sm:$0xff]  ;;  %v33_v7 = vld [vmem:[#allocation2 + $0x8] sm:$0xff] }
  0x91   :  { %v39_v5 = vpop.xlane.xlu0 %38 }
  0x92   :  { %v42_v6 = vadd.f32 %v39_v5, %v32_v4 }
  0x94   :  { %45 = vst.msk [vmem:[#allocation2] sm:$0xff] %vm29_vm0, %v42_v6 }
  0x95   :  { %v41_v8 = vpop.xlane.xlu0 %40 }
  0x96   :  { %v43_v9 = vadd.f32 %v41_v8, %v33_v7 }
  0x98   :  { %46 = vst.msk [vmem:[#allocation2 + $0x8] sm:$0xff] %vm29_vm0, %v43_v9 }
  0x9b   :  { %v50_v10 = vld [vmem:[#allocation2] sm:$0xff] }
  0x9c   :  { %52 = vst.msk [vmem:[%s96_s1] sm:$0xff] %vm29_vm0, %v50_v10 }
  0x9f   :  { %v51_v11 = vld [vmem:[#allocation2 + $0x8] sm:$0xff] }
  0xa0   :  { %53 = vst.msk [vmem:[%s96_s1 + $0x8] sm:$0xff] %vm29_vm0, %v51_v11 }

</bundles_post_ra>
